<compile_context>
chip_gen: v7x
topology: tpu7x:2x2x1
jax: 0.10.0
libtpu: 0.0.40
codegen_flags: <defaults>
</compile_context>

<pallas_src>
import functools

import numpy as np
import jax
import jax.numpy as jnp
from jax.experimental import pallas as pl
from jax.experimental.pallas import tpu as pltpu

_LANE = 128
_SUBLANE = 8
_NEG = float(jnp.finfo(jnp.float32).min)


def _round_up(v, m):
    return ((v + m - 1) // m) * m


def pointnet_pool_kernel(fg_ref, off_ref, x_ref, pos_ref, w1x_ref, w1p_ref,
                         b1_ref, w2_ref, b2_ref, out_ref, *,
                         tile_n, tiles_per_split, num_graphs, graphs_per_tile):
    """Fused per-point MLP + segment (per-graph) max pool for one tile of points.

    fg_ref   : (tiles_total,)      int32 SMEM - first graph id intersecting each tile
    off_ref  : (num_graphs + 1,)   int32 SMEM - per-graph row offsets (PyG contiguous)
    x_ref    : (tile_n, F_in)      compute dtype
    pos_ref  : (tile_n, POS_DIM)   compute dtype
    w1x_ref  : (F_in, H_pad)   w1p_ref: (POS_DIM, H_pad)   b1_ref: (1, H_pad) f32
    w2_ref   : (H_pad, C_pad)  b2_ref: (1, C_pad) f32
    out_ref  : (G_pad, C_pad) f32  - per-split resident running-max accumulator
    """
    neg = jnp.float32(_NEG)

    # Initialize this split's accumulator on its first tile only.
    @pl.when(pl.program_id(1) == 0)
    def _init():
        out_ref[...] = jnp.full(out_ref.shape, neg, dtype=out_ref.dtype)

    # --- per-point MLP on the MXU (compute dtype inputs, f32 accumulation) ---
    h = (jnp.dot(x_ref[...], w1x_ref[...], preferred_element_type=jnp.float32)
         + jnp.dot(pos_ref[...], w1p_ref[...], preferred_element_type=jnp.float32)
         + b1_ref[...])
    h = jnp.maximum(h, 0.0)                                   # f32 (tile_n, H_pad)
    y = jnp.dot(h.astype(w2_ref.dtype), w2_ref[...],
                preferred_element_type=jnp.float32) + b2_ref[...]
    y = jnp.maximum(y, 0.0)                                   # f32 (tile_n, C_pad)

    # --- segment max over this tile, bounded to graphs_per_tile graphs ---
    tile_idx = pl.program_id(0) * tiles_per_split + pl.program_id(1)
    tile_start = tile_idx * tile_n
    row_id = jax.lax.broadcasted_iota(jnp.int32, (tile_n, 1), 0) + tile_start
    first_g = fg_ref[tile_idx]                                # SMEM scalar

    for j in range(graphs_per_tile):                          # static, small bound
        g = first_g + j
        g_safe = jnp.minimum(g, num_graphs - 1)               # keep SMEM index in-bounds
        seg_start = off_ref[g_safe]
        seg_end = off_ref[g_safe + 1]
        mask = jnp.logical_and(row_id >= seg_start, row_id < seg_end)
        contrib = jnp.max(jnp.where(mask, y, neg), axis=0, keepdims=True)  # (1, C_pad)
        valid = jnp.logical_and(
            g < num_graphs,
            jnp.logical_and(seg_start < tile_start + tile_n, seg_end > tile_start))

        @pl.when(valid)
        def _update(g=g, contrib=contrib):
            cur = out_ref[pl.ds(g, 1), :]
            out_ref[pl.ds(g, 1), :] = jnp.maximum(cur, contrib)


def pointnet_pool(x, pos, batch, w1, b1, w2, b2, *, num_graphs,
                  tile_n=2048, n_splits=2, compute_dtype=jnp.bfloat16,
                  max_graphs_per_tile=None):
    """Padding/dtype glue in JAX; fused MLP + segment max pool in Pallas.

    Contract (matches PyG semantics / the previous version):
      * `batch` must be sorted/contiguous (as produced by torch_geometric batching)
        with ids in [0, num_graphs).  Empty graphs yield f32 finfo.min rows.
      * If `batch` is a tracer, pass `max_graphs_per_tile` explicitly (static bound
        on graphs intersecting any point tile).
    """
    assert num_graphs >= 1
    n, f_in = x.shape
    pos_dim = pos.shape[1]
    hid = w1.shape[1]
    cout = w2.shape[1]
    assert w1.shape[0] == f_in + pos_dim

    h_pad = _round_up(hid, _LANE)
    c_pad = _round_up(cout, _LANE)
    g_pad = _round_up(num_graphs, _SUBLANE)

    # Point-axis tiling: multiple of 8 sublanes; no bigger than needed for small N.
    tile_n = _round_up(max(_SUBLANE, min(tile_n, _round_up(n, _SUBLANE))), _SUBLANE)
    grid_n = pl.cdiv(n, tile_n)
    n_splits = max(1, min(n_splits, grid_n))
    tiles_per_split = pl.cdiv(grid_n, n_splits)
    tiles_total = n_splits * tiles_per_split
    n_pad = tiles_total * tile_n

    # Static bound on graphs intersecting any single tile (PyG batch is sorted).
    if max_graphs_per_tile is None:
        b_host = np.asarray(jax.device_get(batch)).astype(np.int64)
        assert b_host.shape == (n,)
        assert np.all(np.diff(b_host) >= 0), "batch must be sorted/contiguous (PyG)"
        span = 1
        for s in range(0, n, tile_n):
            e = min(s + tile_n, n)
            span = max(span, int(b_host[e - 1]) - int(b_host[s]) + 1)
        max_graphs_per_tile = span
    graphs_per_tile = int(max(1, min(int(max_graphs_per_tile), num_graphs)))

    # Per-graph row offsets + per-tile first-graph index (scalar-prefetched to SMEM).
    counts = jnp.bincount(batch.astype(jnp.int32), length=num_graphs)
    offsets = jnp.concatenate(
        [jnp.zeros((1,), jnp.int32), jnp.cumsum(counts).astype(jnp.int32)])
    tile_starts = jnp.arange(tiles_total, dtype=jnp.int32) * tile_n
    first_graph = jnp.clip(
        jnp.searchsorted(offsets, tile_starts, side="right") - 1,
        0, num_graphs - 1).astype(jnp.int32)

    cd = compute_dtype
    cd_size = jnp.dtype(cd).itemsize

    def pad2(a, r, c, dtype):
        a = a.astype(dtype)
        return jnp.pad(a, ((0, r - a.shape[0]), (0, c - a.shape[1])))

    # Split W1 so the kernel consumes x and pos directly (no concat round trip).
    w1x_p = pad2(w1[:f_in], f_in, h_pad, cd)                  # (F_in, H_pad)
    w1p_p = pad2(w1[f_in:], pos_dim, h_pad, cd)               # (POS_DIM, H_pad)
    b1_p = pad2(b1.reshape(1, hid), 1, h_pad, jnp.float32)    # (1, H_pad)
    w2_p = pad2(w2, h_pad, c_pad, cd)                         # (H_pad, C_pad)
    b2_p = pad2(b2.reshape(1, cout), 1, c_pad, jnp.float32)   # (1, C_pad)

    x_p = pad2(x, n_pad, f_in, cd)                            # (N_pad, F_in)
    pos_p = pad2(pos, n_pad, pos_dim, cd)                     # (N_pad, POS_DIM)

    kernel = functools.partial(
        pointnet_pool_kernel, tile_n=tile_n, tiles_per_split=tiles_per_split,
        num_graphs=num_graphs, graphs_per_tile=graphs_per_tile)

    # VMEM budget from actual buffers (double-buffered blocks + f32 temporaries).
    block_bytes = 2 * (tile_n * (f_in + pos_dim) * cd_size
                       + (f_in + pos_dim) * h_pad * cd_size + h_pad * c_pad * cd_size
                       + (h_pad + c_pad) * 4
                       + g_pad * c_pad * 4)
    temp_bytes = tile_n * (2 * h_pad + 3 * c_pad) * 4
    vmem_limit = int(min(max(2 * (block_bytes + temp_bytes), 8 << 20), 60 << 20))

    flops = 2 * n_pad * ((f_in + pos_dim) * h_pad + h_pad * c_pad)
    bytes_accessed = int(n_pad * (f_in + pos_dim) * cd_size
                         + (f_in + pos_dim) * h_pad * cd_size
                         + h_pad * c_pad * cd_size + (h_pad + c_pad) * 4
                         + n_splits * g_pad * c_pad * 4
                         + 4 * (tiles_total + num_graphs + 1))

    grid_spec = pltpu.PrefetchScalarGridSpec(
        num_scalar_prefetch=2,
        grid=(n_splits, tiles_per_split),
        in_specs=[
            pl.BlockSpec((tile_n, f_in),
                         lambda s, t, fg, off: (s * tiles_per_split + t, 0)),
            pl.BlockSpec((tile_n, pos_dim),
                         lambda s, t, fg, off: (s * tiles_per_split + t, 0)),
            pl.BlockSpec((f_in, h_pad), lambda s, t, fg, off: (0, 0)),     # W1_x
            pl.BlockSpec((pos_dim, h_pad), lambda s, t, fg, off: (0, 0)),  # W1_pos
            pl.BlockSpec((1, h_pad), lambda s, t, fg, off: (0, 0)),        # b1
            pl.BlockSpec((h_pad, c_pad), lambda s, t, fg, off: (0, 0)),    # W2
            pl.BlockSpec((1, c_pad), lambda s, t, fg, off: (0, 0)),        # b2
        ],
        out_specs=pl.BlockSpec((g_pad, c_pad), lambda s, t, fg, off: (s, 0)),
    )

    out_pad = pl.pallas_call(
        kernel,
        out_shape=jax.ShapeDtypeStruct((n_splits * g_pad, c_pad), jnp.float32),
        grid_spec=grid_spec,
        compiler_params=pltpu.CompilerParams(
            dimension_semantics=("parallel", "arbitrary"),
            vmem_limit_bytes=vmem_limit),
        cost_estimate=pl.CostEstimate(
            flops=flops, transcendentals=0, bytes_accessed=bytes_accessed),
    )(first_graph, offsets, x_p, pos_p, w1x_p, w1p_p, b1_p, w2_p, b2_p)

    # Combine per-split partial maxima (max is associative), drop padding.
    out = jnp.max(out_pad.reshape(n_splits, g_pad, c_pad), axis=0)
    return out[:num_graphs, :cout]


def pointnet_pool_ref(x, pos, batch, w1, b1, w2, b2, *, num_graphs):
    """Pure-JAX f32 reference (semantics of the PyTorch module)."""
    hp = jax.lax.Precision.HIGHEST
    xcat = jnp.concatenate([x, pos], axis=1)
    h = jnp.maximum(jnp.dot(xcat, w1, precision=hp) + b1, 0.0)
    y = jnp.maximum(jnp.dot(h, w2, precision=hp) + b2, 0.0)
    neg = jnp.finfo(jnp.float32).min
    outs = [jnp.max(jnp.where((batch == g)[:, None], y, neg), axis=0)
            for g in range(num_graphs)]
    return jnp.stack(outs, axis=0)


if __name__ == "__main__":
    # Small shapes consistent with the module: N points, F_in node features,
    # 3-D positions, 3 graphs of unequal size (PyG-style contiguous batching).
    N, F_IN, POS_DIM = 64, 4, 3
    HIDDEN, C_OUT = 32, 32
    NUM_GRAPHS = 3
    sizes = [20, 23, 21]

    key = jax.random.PRNGKey(0)
    kx, kp, kw1, kb1, kw2, kb2 = jax.random.split(key, 6)

    x = jax.random.normal(kx, (N, F_IN), dtype=jnp.float32)
    pos = jax.random.normal(kp, (N, POS_DIM), dtype=jnp.float32)
    batch = jnp.concatenate(
        [jnp.full((s,), g, dtype=jnp.int32) for g, s in enumerate(sizes)])

    # Deterministic synthetic MLP parameters (the `nn` of the module).
    w1 = 0.1 * jax.random.normal(kw1, (F_IN + POS_DIM, HIDDEN), dtype=jnp.float32)
    b1 = 0.1 * jax.random.normal(kb1, (HIDDEN,), dtype=jnp.float32)
    w2 = 0.1 * jax.random.normal(kw2, (HIDDEN, C_OUT), dtype=jnp.float32)
    b2 = 0.1 * jax.random.normal(kb2, (C_OUT,), dtype=jnp.float32)

    ref = pointnet_pool_ref(x, pos, batch, w1, b1, w2, b2, num_graphs=NUM_GRAPHS)

    # f32, forced multi-tile + 2-way parallel split: exercises tiles that straddle
    # graph boundaries and the split-combine path.  Exact-ish match vs reference.
    out_tiled = pointnet_pool(x, pos, batch, w1, b1, w2, b2, num_graphs=NUM_GRAPHS,
                              tile_n=16, n_splits=2, compute_dtype=jnp.float32)
    out_tiled = jax.block_until_ready(out_tiled)
    assert out_tiled.shape == (NUM_GRAPHS, C_OUT), out_tiled.shape
    assert jnp.allclose(out_tiled, ref, atol=1e-5, rtol=1e-5), "tiled f32 mismatch"

    # f32, default (single-tile) path.
    out_f32 = pointnet_pool(x, pos, batch, w1, b1, w2, b2,
                            num_graphs=NUM_GRAPHS, compute_dtype=jnp.float32)
    out_f32 = jax.block_until_ready(out_f32)
    assert out_f32.shape == (NUM_GRAPHS, C_OUT), out_f32.shape
    assert jnp.allclose(out_f32, ref, atol=1e-5, rtol=1e-5), "f32 mismatch vs reference"

    # bf16 MXU path (default): loose tolerance.
    out_bf16 = pointnet_pool(x, pos, batch, w1, b1, w2, b2,
                             num_graphs=NUM_GRAPHS, compute_dtype=jnp.bfloat16)
    out_bf16 = jax.block_until_ready(out_bf16)
    assert out_bf16.shape == (NUM_GRAPHS, C_OUT), out_bf16.shape
    assert jnp.allclose(out_bf16, ref, atol=3e-2, rtol=3e-2), "bf16 mismatch vs reference"

    print("KERNEL_OK")
</pallas_src>

<mosaic_0001>
module attributes {stable_mosaic.version = 11 : i64} {
  func.func @pointnet_pool_kernel(%arg0: i32, %arg1: i32, %arg2: memref<4xi32, #tpu.memory_space<smem>>, %arg3: memref<4xi32, #tpu.memory_space<smem>>, %arg4: memref<16x4xf32, #tpu.memory_space<vmem>>, %arg5: memref<16x3xf32, #tpu.memory_space<vmem>>, %arg6: memref<4x128xf32, #tpu.memory_space<vmem>>, %arg7: memref<3x128xf32, #tpu.memory_space<vmem>>, %arg8: memref<1x128xf32, #tpu.memory_space<vmem>>, %arg9: memref<128x128xf32, #tpu.memory_space<vmem>>, %arg10: memref<1x128xf32, #tpu.memory_space<vmem>>, %arg11: memref<8x128xf32, #tpu.memory_space<vmem>>) attributes {dimension_semantics = [#tpu.dimension_semantics<parallel>, #tpu.dimension_semantics<arbitrary>], iteration_bounds = array<i64: 2, 2>, scalar_prefetch = 2 : i64, scratch_operands = 0 : i64, tpu.core_type = #tpu.core_type<tc>, window_params = [{transform_indices = @transform_0, window_bounds = array<i64: 16, 4>}, {transform_indices = @transform_1, window_bounds = array<i64: 16, 3>}, {pipeline_mode = #tpu.pipeline_mode<synchronous>, transform_indices = @transform_2, window_bounds = array<i64: 4, 128>}, {pipeline_mode = #tpu.pipeline_mode<synchronous>, transform_indices = @transform_3, window_bounds = array<i64: 3, 128>}, {pipeline_mode = #tpu.pipeline_mode<synchronous>, transform_indices = @transform_4, window_bounds = array<i64: 1, 128>}, {pipeline_mode = #tpu.pipeline_mode<synchronous>, transform_indices = @transform_5, window_bounds = array<i64: 128, 128>}, {pipeline_mode = #tpu.pipeline_mode<synchronous>, transform_indices = @transform_6, window_bounds = array<i64: 1, 128>}, {transform_indices = @transform_7, window_bounds = array<i64: 8, 128>}]} {
    %c0_i32 = arith.constant 0 : i32
    %0 = arith.cmpi eq, %arg1, %c0_i32 : i32
    %1 = arith.extui %0 : i1 to i32
    %cst = arith.constant -3.40282347E+38 : f32
    %c0_i32_0 = arith.constant 0 : i32
    %2 = arith.cmpi ne, %1, %c0_i32_0 : i32
    scf.if %2 {
      %82 = vector.broadcast %cst : f32 to vector<8x128xf32>
      %c0_33 = arith.constant 0 : index
      %c0_34 = arith.constant 0 : index
      %83 = vector.load %arg11[%c0_33, %c0_34] : memref<8x128xf32, #tpu.memory_space<vmem>>, vector<8x128xf32>
      tpu.vector_store %arg11[%c0_33, %c0_34], %82 {strides = array<i32>} : memref<8x128xf32, #tpu.memory_space<vmem>>, vector<8x128xf32>,
    } else {
    }
    %c0 = arith.constant 0 : index
    %c0_1 = arith.constant 0 : index
    %3 = vector.load %arg4[%c0, %c0_1] : memref<16x4xf32, #tpu.memory_space<vmem>>, vector<16x4xf32>
    %c0_2 = arith.constant 0 : index
    %c0_3 = arith.constant 0 : index
    %4 = vector.load %arg6[%c0_2, %c0_3] : memref<4x128xf32, #tpu.memory_space<vmem>>, vector<4x128xf32>
    %cst_4 = arith.constant dense<0.000000e+00> : vector<16x128xf32>
    %5 = tpu.matmul %3, %4, %cst_4 {dimension_numbers = #tpu.dot_dimension_numbers<[1], [0], [0], [1], [0, 0, 1, 1], [], []>} : vector<16x4xf32>, vector<4x128xf32>, vector<16x128xf32> -> vector<16x128xf32>
    %c0_5 = arith.constant 0 : index
    %c0_6 = arith.constant 0 : index
    %6 = vector.load %arg5[%c0_5, %c0_6] : memref<16x3xf32, #tpu.memory_space<vmem>>, vector<16x3xf32>
    %c0_7 = arith.constant 0 : index
    %c0_8 = arith.constant 0 : index
    %7 = vector.load %arg7[%c0_7, %c0_8] : memref<3x128xf32, #tpu.memory_space<vmem>>, vector<3x128xf32>
    %cst_9 = arith.constant dense<0.000000e+00> : vector<16x128xf32>
    %8 = tpu.matmul %6, %7, %cst_9 {dimension_numbers = #tpu.dot_dimension_numbers<[1], [0], [0], [1], [0, 0, 1, 1], [], []>} : vector<16x3xf32>, vector<3x128xf32>, vector<16x128xf32> -> vector<16x128xf32>
    %9 = arith.addf %5, %8 : vector<16x128xf32>
    %c0_10 = arith.constant 0 : index
    %c0_11 = arith.constant 0 : index
    %10 = vector.load %arg8[%c0_10, %c0_11] : memref<1x128xf32, #tpu.memory_space<vmem>>, vector<1x128xf32>
    %11 = vector.broadcast %10 : vector<1x128xf32> to vector<16x128xf32>
    %12 = arith.addf %9, %11 : vector<16x128xf32>
    %cst_12 = arith.constant 0.000000e+00 : f32
    %13 = vector.broadcast %cst_12 : f32 to vector<16x128xf32>
    %14 = arith.maximumf %12, %13 : vector<16x128xf32>
    %c0_13 = arith.constant 0 : index
    %c0_14 = arith.constant 0 : index
    %15 = vector.load %arg9[%c0_13, %c0_14] : memref<128x128xf32, #tpu.memory_space<vmem>>, vector<128x128xf32>
    %cst_15 = arith.constant dense<0.000000e+00> : vector<16x128xf32>
    %16 = tpu.matmul %14, %15, %cst_15 {dimension_numbers = #tpu.dot_dimension_numbers<[1], [0], [0], [1], [0, 0, 1, 1], [], []>} : vector<16x128xf32>, vector<128x128xf32>, vector<16x128xf32> -> vector<16x128xf32>
    %c0_16 = arith.constant 0 : index
    %c0_17 = arith.constant 0 : index
    %17 = vector.load %arg10[%c0_16, %c0_17] : memref<1x128xf32, #tpu.memory_space<vmem>>, vector<1x128xf32>
    %18 = vector.broadcast %17 : vector<1x128xf32> to vector<16x128xf32>
    %19 = arith.addf %16, %18 : vector<16x128xf32>
    %cst_18 = arith.constant 0.000000e+00 : f32
    %20 = vector.broadcast %cst_18 : f32 to vector<16x128xf32>
    %21 = arith.maximumf %19, %20 : vector<16x128xf32>
    %c2_i32 = arith.constant 2 : i32
    %22 = arith.muli %arg0, %c2_i32 : i32
    %23 = arith.addi %22, %arg1 : i32
    %c16_i32 = arith.constant 16 : i32
    %24 = arith.muli %23, %c16_i32 : i32
    %25 = tpu.iota {dimensions = array<i32: 0>} : vector<16x1xi32>
    %26 = vector.broadcast %24 : i32 to vector<16x1xi32>
    %27 = arith.addi %25, %26 : vector<16x1xi32>
    %28 = arith.index_cast %23 : i32 to index
    %29 = memref.load %arg2[%28] : memref<4xi32, #tpu.memory_space<smem>>
    %c0_i32_19 = arith.constant 0 : i32
    %30 = arith.addi %29, %c0_i32_19 : i32
    %c2_i32_20 = arith.constant 2 : i32
    %31 = arith.minsi %30, %c2_i32_20 : i32
    %32 = arith.index_cast %31 : i32 to index
    %33 = memref.load %arg3[%32] : memref<4xi32, #tpu.memory_space<smem>>
    %c1_i32 = arith.constant 1 : i32
    %34 = arith.addi %31, %c1_i32 : i32
    %35 = arith.index_cast %34 : i32 to index
    %36 = memref.load %arg3[%35] : memref<4xi32, #tpu.memory_space<smem>>
    %37 = vector.broadcast %33 : i32 to vector<16x1xi32>
    %38 = arith.cmpi sge, %27, %37 : vector<16x1xi32>
    %39 = vector.broadcast %36 : i32 to vector<16x1xi32>
    %40 = arith.cmpi slt, %27, %39 : vector<16x1xi32>
    %41 = arith.andi %38, %40 : vector<16x1xi1>
    %cst_21 = arith.constant -3.40282347E+38 : f32
    %42 = vector.shape_cast %41 : vector<16x1xi1> to vector<16x1xi1>
    %43 = vector.broadcast %42 : vector<16x1xi1> to vector<16x128xi1>
    %44 = vector.broadcast %cst_21 : f32 to vector<16x128xf32>
    %45 = arith.select %43, %21, %44 : vector<16x128xi1>, vector<16x128xf32>
    %cst_22 = arith.constant dense<0xFF800000> : vector<128xf32>
    %46 = vector.multi_reduction <maximumf>, %45, %cst_22 [0] : vector<16x128xf32> to vector<128xf32>
    %47 = vector.shape_cast %46 : vector<128xf32> to vector<1x128xf32>
    %c3_i32 = arith.constant 3 : i32
    %48 = arith.cmpi slt, %30, %c3_i32 : i32
    %c16_i32_23 = arith.constant 16 : i32
    %49 = arith.addi %24, %c16_i32_23 : i32
    %50 = arith.cmpi slt, %33, %49 : i32
    %51 = arith.cmpi sgt, %36, %24 : i32
    %52 = arith.andi %50, %51 : i1
    %53 = arith.andi %48, %52 : i1
    %54 = arith.extui %53 : i1 to i32
    %c0_i32_24 = arith.constant 0 : i32
    %55 = arith.cmpi ne, %54, %c0_i32_24 : i32
    scf.if %55 {
      %82 = arith.index_cast %30 : i32 to index
      %c0_33 = arith.constant 0 : index
      %83 = vector.load %arg11[%82, %c0_33] : memref<8x128xf32, #tpu.memory_space<vmem>>, vector<1x128xf32>
      %84 = arith.maximumf %83, %47 : vector<1x128xf32>
      %85 = arith.index_cast %30 : i32 to index
      %c0_34 = arith.constant 0 : index
      %86 = vector.load %arg11[%85, %c0_34] : memref<8x128xf32, #tpu.memory_space<vmem>>, vector<1x128xf32>
      tpu.vector_store %arg11[%85, %c0_34], %84 {strides = array<i32>} : memref<8x128xf32, #tpu.memory_space<vmem>>, vector<1x128xf32>,
    } else {
    }
    %c1_i32_25 = arith.constant 1 : i32
    %56 = arith.addi %29, %c1_i32_25 : i32
    %c2_i32_26 = arith.constant 2 : i32
    %57 = arith.minsi %56, %c2_i32_26 : i32
    %58 = arith.index_cast %57 : i32 to index
    %59 = memref.load %arg3[%58] : memref<4xi32, #tpu.memory_space<smem>>
    %c1_i32_27 = arith.constant 1 : i32
    %60 = arith.addi %57, %c1_i32_27 : i32
    %61 = arith.index_cast %60 : i32 to index
    %62 = memref.load %arg3[%61] : memref<4xi32, #tpu.memory_space<smem>>
    %63 = vector.broadcast %59 : i32 to vector<16x1xi32>
    %64 = arith.cmpi sge, %27, %63 : vector<16x1xi32>
    %65 = vector.broadcast %62 : i32 to vector<16x1xi32>
    %66 = arith.cmpi slt, %27, %65 : vector<16x1xi32>
    %67 = arith.andi %64, %66 : vector<16x1xi1>
    %cst_28 = arith.constant -3.40282347E+38 : f32
    %68 = vector.shape_cast %67 : vector<16x1xi1> to vector<16x1xi1>
    %69 = vector.broadcast %68 : vector<16x1xi1> to vector<16x128xi1>
    %70 = vector.broadcast %cst_28 : f32 to vector<16x128xf32>
    %71 = arith.select %69, %21, %70 : vector<16x128xi1>, vector<16x128xf32>
    %cst_29 = arith.constant dense<0xFF800000> : vector<128xf32>
    %72 = vector.multi_reduction <maximumf>, %71, %cst_29 [0] : vector<16x128xf32> to vector<128xf32>
    %73 = vector.shape_cast %72 : vector<128xf32> to vector<1x128xf32>
    %c3_i32_30 = arith.constant 3 : i32
    %74 = arith.cmpi slt, %56, %c3_i32_30 : i32
    %c16_i32_31 = arith.constant 16 : i32
    %75 = arith.addi %24, %c16_i32_31 : i32
    %76 = arith.cmpi slt, %59, %75 : i32
    %77 = arith.cmpi sgt, %62, %24 : i32
    %78 = arith.andi %76, %77 : i1
    %79 = arith.andi %74, %78 : i1
    %80 = arith.extui %79 : i1 to i32
    %c0_i32_32 = arith.constant 0 : i32
    %81 = arith.cmpi ne, %80, %c0_i32_32 : i32
    scf.if %81 {
      %82 = arith.index_cast %56 : i32 to index
      %c0_33 = arith.constant 0 : index
      %83 = vector.load %arg11[%82, %c0_33] : memref<8x128xf32, #tpu.memory_space<vmem>>, vector<1x128xf32>
      %84 = arith.maximumf %83, %73 : vector<1x128xf32>
      %85 = arith.index_cast %56 : i32 to index
      %c0_34 = arith.constant 0 : index
      %86 = vector.load %arg11[%85, %c0_34] : memref<8x128xf32, #tpu.memory_space<vmem>>, vector<1x128xf32>
      tpu.vector_store %arg11[%85, %c0_34], %84 {strides = array<i32>} : memref<8x128xf32, #tpu.memory_space<vmem>>, vector<1x128xf32>,
    } else {
    }
    return
  }
  func.func @transform_0(%arg0: i32, %arg1: i32, %arg2: memref<4xi32, #tpu.memory_space<smem>>, %arg3: memref<4xi32, #tpu.memory_space<smem>>) -> (i32, i32) {
    %c2_i32 = arith.constant 2 : i32
    %0 = arith.muli %arg0, %c2_i32 : i32
    %1 = arith.addi %0, %arg1 : i32
    %c0_i32 = arith.constant 0 : i32
    %c0_i32_0 = arith.constant 0 : i32
    return %1, %c0_i32 : i32, i32
  }
  func.func @transform_1(%arg0: i32, %arg1: i32, %arg2: memref<4xi32, #tpu.memory_space<smem>>, %arg3: memref<4xi32, #tpu.memory_space<smem>>) -> (i32, i32) {
    %c2_i32 = arith.constant 2 : i32
    %0 = arith.muli %arg0, %c2_i32 : i32
    %1 = arith.addi %0, %arg1 : i32
    %c0_i32 = arith.constant 0 : i32
    %c0_i32_0 = arith.constant 0 : i32
    return %1, %c0_i32 : i32, i32
  }
  func.func @transform_2(%arg0: i32, %arg1: i32, %arg2: memref<4xi32, #tpu.memory_space<smem>>, %arg3: memref<4xi32, #tpu.memory_space<smem>>) -> (i32, i32) {
    %c0_i32 = arith.constant 0 : i32
    %c0_i32_0 = arith.constant 0 : i32
    %c0_i32_1 = arith.constant 0 : i32
    return %c0_i32, %c0_i32_0 : i32, i32
  }
  func.func @transform_3(%arg0: i32, %arg1: i32, %arg2: memref<4xi32, #tpu.memory_space<smem>>, %arg3: memref<4xi32, #tpu.memory_space<smem>>) -> (i32, i32) {
    %c0_i32 = arith.constant 0 : i32
    %c0_i32_0 = arith.constant 0 : i32
    %c0_i32_1 = arith.constant 0 : i32
    return %c0_i32, %c0_i32_0 : i32, i32
  }
  func.func @transform_4(%arg0: i32, %arg1: i32, %arg2: memref<4xi32, #tpu.memory_space<smem>>, %arg3: memref<4xi32, #tpu.memory_space<smem>>) -> (i32, i32) {
    %c0_i32 = arith.constant 0 : i32
    %c0_i32_0 = arith.constant 0 : i32
    %c0_i32_1 = arith.constant 0 : i32
    return %c0_i32, %c0_i32_0 : i32, i32
  }
  func.func @transform_5(%arg0: i32, %arg1: i32, %arg2: memref<4xi32, #tpu.memory_space<smem>>, %arg3: memref<4xi32, #tpu.memory_space<smem>>) -> (i32, i32) {
    %c0_i32 = arith.constant 0 : i32
    %c0_i32_0 = arith.constant 0 : i32
    %c0_i32_1 = arith.constant 0 : i32
    return %c0_i32, %c0_i32_0 : i32, i32
  }
  func.func @transform_6(%arg0: i32, %arg1: i32, %arg2: memref<4xi32, #tpu.memory_space<smem>>, %arg3: memref<4xi32, #tpu.memory_space<smem>>) -> (i32, i32) {
    %c0_i32 = arith.constant 0 : i32
    %c0_i32_0 = arith.constant 0 : i32
    %c0_i32_1 = arith.constant 0 : i32
    return %c0_i32, %c0_i32_0 : i32, i32
  }
  func.func @transform_7(%arg0: i32, %arg1: i32, %arg2: memref<4xi32, #tpu.memory_space<smem>>, %arg3: memref<4xi32, #tpu.memory_space<smem>>) -> (i32, i32) {
    %c0_i32 = arith.constant 0 : i32
    %c0_i32_0 = arith.constant 0 : i32
    return %arg0, %c0_i32 : i32, i32
  }
}

</mosaic_0001>

<bundles_post_ra>
// kernel: tpu_custom_call.1
= control target key start
LH: loop header
LB: loop body
LE: loop exit
PB: predicated region body
PF: predicated region fallthrough
CT: control target
= control target key end

     0   :  { %s1463_s0 = inlined_call_operand.vmem [shape: s32[4], index: 0, kind: input, shape index: {}]   ;;  %s1464_s2 = inlined_call_operand.vmem [shape: f32[64,4], index: 2, kind: input, shape index: {}]   ;;  %s1465_s3 = inlined_call_operand.vmem [shape: f32[64,3], index: 3, kind: input, shape index: {}]   ;;  %s1466_s4 = inlined_call_operand.vmem [shape: f32[4,128], index: 4, kind: input, shape index: {}]   ;;  %s1467_s5 = inlined_call_operand.vmem [shape: f32[3,128], index: 5, kind: input, shape index: {}]   ;;  %s1468_s6 = inlined_call_operand.vmem [shape: f32[1,128], index: 6, kind: input, shape index: {}]   ;;  %s1469_s7 = inlined_call_operand.vmem [shape: f32[128,128], index: 7, kind: input, shape index: {}]   ;;  %s1470_s8 = inlined_call_operand.vmem [shape: f32[1,128], index: 8, kind: input, shape index: {}]   ;;  %s1471_s9 = inlined_call_operand.hbm [shape: f32[16,128], index: 9, kind: output, shape index: {}]   ;;  %s1472_s1 = inlined_call_operand.vmem [shape: s32[4], index: 1, kind: input, shape index: {}]  }
   0x1   :  { %s14_s11 = sshll.u32 %s1463_s0, 4  ;;  %s18_s14 = sshll.u32 %s1472_s1, 4  ;;  %s15_s11 = int_to_ptr.vmem [resolvable:$true] %s14_s11  ;;  %s19_s14 = int_to_ptr.vmem [resolvable:$true] %s18_s14 }
   0x2   :  { %s1046_s15 = scalar_lea.vmem %s15_s11, 16  ;;  %p1051_p1 = scmp.lt.s32.totalorder %s15_s11, %s15_s11 }
   0x3   :  { %p1047_p0 = scmp.ne.s32.totalorder %s15_s11, %s1046_s15  ;;  %p1052_p2 = scmp.lt.s32.totalorder %s1046_s15, %s1046_s15 }
   0x5   :  { %p1053_p3 = por %p1052_p2, %p1051_p1 }
   0x7   :  { %p1054_p4 = pnand %p1053_p3, %p1047_p0 }
   0x9   :  { %1057 = shalt.err (!%p1054_p4)  }
   0xa   :  { %s1168_s16 = smov [#allocation3]   ;;  %s1058_s17 = scalar_lea.vmem %s19_s14, 16 }
   0xb   :  { %17 = dma.vmem_to_smem %s15_s11, 16, %s1168_s16, [#allocation2] }
   0xc   :  { %p1059_p5 = scmp.ne.s32.totalorder %s19_s14, %s1058_s17  ;;  %p1063_p6 = scmp.lt.s32.totalorder %s19_s14, %s19_s14 }
   0xd   :  { %p1064_p7 = scmp.lt.s32.totalorder %s1058_s17, %s1058_s17 }
   0xf   :  { %p1065_p8 = por %p1064_p7, %p1063_p6 }
  0x11   :  { %p1066_p9 = pnand %p1065_p8, %p1059_p5 }
  0x13   :  { %1069 = shalt.err (!%p1066_p9)  }
  0x14   :  { %s1169_s0 = smov [#allocation4]  }
  0x15   :  { %21 = dma.vmem_to_smem %s19_s14, 16, %s1169_s0, [#allocation2] }
  0x16   :  { %1130 = dma.done.wait [#allocation2], 32 }
  0x17   :  { %1131 = vsyncadd [#allocation2], 4294967264 }
  0x18   :  { %23 = sfence }
  0x19   :  { %24 = vsyncpa [#allocation6], 0 }
  0x1a   :  { %26 = vsyncpa [#allocation6 + $0x1], 0  ;;  %s1228_s1 = smov 0   ;;  %s1230_s18 = smov 0  }
  0x1b   :  { %s1232_s19 = smov 0   ;;  %s1234_s20 = smov 0  }
  0x1c   :  { %s1236_s21 = smov 0   ;;  %s1238_s22 = smov 0  }
  0x1d   :  { %s1240_s23 = smov 0   ;;  %s1242_s24 = smov 0  }
  0x1e LB: > { %1475 = sst [smem:[#allocation9_spill]] %s1162_s23  ;;  %s836_s25 = sadd.s32 4294967295, %s1166_s24   ;;  %s1166_s24 = sphi %s1242_s24, %s32_s24   ;;  %s1162_s23 = sphi %s1240_s23, %s1483_s23   ;;  %s1158_s22 = sphi %s1238_s22, %s1488_s22   ;;  %s1154_s21 = sphi %s1236_s21, %s1481_s21   ;;  %s1150_s20 = sphi %s1234_s20, %s1487_s20   ;;  %s1146_s19 = sphi %s1232_s19, %s1486_s19   ;;  %s1142_s18 = sphi %s1230_s18, %s1485_s18   ;;  %s1138_s1 = sphi %s1228_s1, %s1484_s1  }
  0x1f   : > { %s837_s26 = sadd.s32 4294967294, %s1166_s24   ;;  %s41_s27 = sadd.s32 1, %s1158_s22 }
  0x20   : > { %p42_p10 = scmp.ge.s32.totalorder %s41_s27, 2  ;;  %s44_s28 = sadd.s32 1, %s1162_s23 }
  0x21   : > { %p226_p11 = scmp.ne.s32.totalorder %s1146_s19, %s1142_s18  ;;  %p227_p12 = scmp.eq.s32.totalorder %s836_s25, 3 }
  0x22   : > { %s1490_s27 = smov (%p42_p10, %s41_s27), 0  ;;  %s1492_s28 = smov (!%p42_p10, %s44_s28), %s1162_s23 }
  0x23   : > { %1476 = sst [smem:[#allocation10_spill]] %s1490_s27  ;;  %p1277_p13 = por %p227_p12, %p226_p11 }
  0x24   : > { %p232_p0 = scmp.ne.s32.totalorder %s1142_s18, %s1138_s1  ;;  %p46_p1 = scmp.ge.s32.totalorder %s1492_s28, 2 }
  0x25   : > { %p233_p2 = scmp.eq.s32.totalorder %s837_s26, 3  ;;  %p844_p3 = scmp.ge.s32.totalorder %s1166_s24, 1 }
  0x26   : > { %p292_p4 = scmp.lt.s32.totalorder %s1166_s24, 5  ;;  %s1494_s28 = smov (%p46_p1, %s1492_s28), 0 }
  0x27   : > { %1478 = sst [smem:[#allocation11_spill]] %s1494_s28  ;;  %p1287_p5 = por %p233_p2, %p232_p0 }
  0x28   : > { %p293_p6 = pnand %p844_p3, %p292_p4  ;;  %s213_s10 = ssub.s32 %s1162_s23, %s1494_s28 }
  0x29   : > { %s216_s11 = sadd.s32 1, %s1146_s19  ;;  %p214_p7 = scmp.eq.s32.totalorder %s213_s10, 0 }
  0x2a   : > { %296 = sbr.rel (%p293_p6) target bundleno = 578 (0x242), region = 48  ;;  %s330_s13 = sand.u32 (!%p293_p6), 1, %s1142_s18  }
  0x2b   : > { %s1295_s12 = scalar_select %p214_p7, %s1146_s19, %s216_s11  }
  0x2c   : > { %s846_s14 = sshll.u32 (!%p293_p6), %s1154_s21, 1  ;;  %s845_s15 = sshll.u32 (!%p293_p6), %s330_s13, 3 }
  0x2d   : > { %s1302_s16 = sadd.s32 (!%p293_p6), %s1150_s20, %s846_s14  ;;  %s1313_s23 = scalar_lea.vmem (!%p293_p6), [#allocation5], %s845_s15 }
  0x2e   : > { %s847_s17 = sshll.u32 (!%p293_p6), %s1302_s16, 1  ;;  %p852_p9 = scmp.ne.s32.totalorder (!%p293_p6), %s1150_s20, 0 }
  0x2f   : > { %p336_p8 = scmp.lt.s32.totalorder (!%p293_p6), %s847_s17, 7 }
  0x31   : > { %s1496_s17 = smov (!%p336_p8, %s847_s17), 7  ;;  %356 = sbr.rel (%p852_p9) target bundleno = 56 (0x38), region = 52 }
  0x32   : > { %s848_s0 = sshll.u32 %s1496_s17, 3  ;;  %v1170_v0 = vmov (!%p852_p9), -3.4028235e+38  }
  0x33   : > { %s1308_s10 = scalar_lea.vmem %s1464_s2, %s848_s0  ;;  %s349_s27 = scalar_lea.vmem %s1465_s3, %s848_s0  ;;  %357 = vst [vmem:[%s1313_s23] sm:$0xff] (!%p852_p9), %v1170_v0 }
  0x38 PF: > { %v363_v1 = vld [vmem:[%s1467_s5] sm:$0x7]  ;;  %vm371_vm0 = vcmask 1042432   ;;  %vm364_vm1 = vcmask 23552   ;;  %v362_v3 = vld [vmem:[%s349_s27 + $0x8] sm:$0xff]  ;;  %vm457_vm2 = vcmask 1043456   ;;  %v650_v38 = vlaneseq }
  0x39   : > { %v361_v2 = vld [vmem:[%s349_s27] sm:$0xff]  ;;  %893 = vmatprep.subr.msk.mxu0 %vm371_vm0, %v363_v1  ;;  %vm450_vm3 = vcmask 31744   ;;  %v548_v7 = vld [vmem:[%s1469_s7 + $0x8] sm:$0xff]  ;;  %v549_v8 = vld [vmem:[%s1469_s7 + $0x10] sm:$0xff]  ;;  %s1379_s25 = sld [smem:[#allocation3 + %s1302_s16]]  ;;  %s1384_s17 = sshll.u32 %s1302_s16, 4 }
  0x3a   : > { %895 = vmatprep.mubr.msk.f32.mxu0 %vm364_vm1, %v361_v2  ;;  %v360_v4 = vld [vmem:[%s1466_s4] sm:$0xf]  ;;  %894 = vmatpush3.msk.msra.mxu0 %vm371_vm0, %v363_v1  ;;  %v550_v10 = vld [vmem:[%s1469_s7 + $0x18] sm:$0xff]  ;;  %v552_v13 = vld [vmem:[%s1469_s7 + $0x28] sm:$0xff]  ;;  %s684_s28 = sadd.s32 16, %s1384_s17  ;;  %v651_v39 = vshrl.u32 %v650_v38, 7  ;;  %v653_v41 = vstv %s1384_s17 }
  0x3b   : > { %v358_v5 = vld [vmem:[%s1308_s10] sm:$0xff]  ;;  %896 = vmatmul.mubr.msk.f32.vlgmr.msra.gmra.mrb[0].mxu0 %vm364_vm1, %v362_v3  ;;  %898 = vmatprep.subr.msk.mxu0 %vm457_vm2, %v360_v4  ;;  %v942_v11 = vpack.c.bf16 %v550_v10, %v549_v8  ;;  %v359_v15 = vld [vmem:[%s1308_s10 + $0x8] sm:$0xff]  ;;  %v553_v16 = vld [vmem:[%s1469_s7 + $0x30] sm:$0xff] }
  0x3c   : > { %v547_v6 = vld [vmem:[%s1469_s7] sm:$0xff]  ;;  %899 = vmatpush3.msk.msra.mxu0 %vm457_vm2, %v360_v4  ;;  %900 = vmatprep.mubr.msk.f32.mxu0 %vm450_vm3, %v358_v5  ;;  %v554_v17 = vld [vmem:[%s1469_s7 + $0x38] sm:$0xff]  ;;  %v556_v20 = vld [vmem:[%s1469_s7 + $0x48] sm:$0xff]  ;;  %v652_v40 = vadd.s32 8, %v651_v39  ;;  %v654_v45 = vadd.s32 %v653_v41, %v651_v39 }
  0x3d   : > { %v938_v9 = vpack.c.bf16 %v548_v7, %v547_v6  ;;  %v551_v12 = vld [vmem:[%s1469_s7 + $0x20] sm:$0xff]  ;;  %v950_v18 = vpack.c.bf16 %v554_v17, %v553_v16  ;;  %v557_v22 = vld [vmem:[%s1469_s7 + $0x50] sm:$0xff]  ;;  %v558_v23 = vld [vmem:[%s1469_s7 + $0x58] sm:$0xff] }
  0x3e   : > { %v946_v14 = vpack.c.bf16 %v552_v13, %v551_v12  ;;  %v555_v19 = vld [vmem:[%s1469_s7 + $0x40] sm:$0xff]  ;;  %v958_v24 = vpack.c.bf16 %v558_v23, %v557_v22  ;;  %v560_v26 = vld [vmem:[%s1469_s7 + $0x68] sm:$0xff]  ;;  %v561_v28 = vld [vmem:[%s1469_s7 + $0x70] sm:$0xff]  ;;  %v655_v42 = vadd.s32 %v653_v41, %v652_v40 }
  0x3f   : > { %939 = vmatprep.subr.bf16.mxu1 %v938_v9  ;;  %v954_v21 = vpack.c.bf16 %v556_v20, %v555_v19  ;;  %v559_v25 = vld [vmem:[%s1469_s7 + $0x60] sm:$0xff]  ;;  %v562_v29 = vld [vmem:[%s1469_s7 + $0x78] sm:$0xff]  ;;  %p657_p10 = scmp.lt.s32.totalorder %s1379_s25, 2  ;;  %p683_p0 = scmp.lt.s32.totalorder %s1379_s25, 3 }
  0x40   : > { %941 = vmatpush3.bf16.msra.mxu1 %v938_v9  ;;  %v962_v27 = vpack.c.bf16 %v560_v26, %v559_v25  ;;  %v966_v30 = vpack.c.bf16 %v562_v29, %v561_v28  ;;  %v859_v31 = vld [vmem:[%s1468_s6] ss:$0 sm:$0xff] }
  0x41   : > { %943 = vmatprep.subr.bf16.mxu1 %v942_v11  ;;  %s658_s26 = scalar_select %p657_p10, %s1379_s25, 2  ;;  %v860_v46 = vld [vmem:[%s1470_s8] ss:$0 sm:$0xff] }
  0x43   : > { %901 = vmatmul.mubr.msk.f32.vlgmr.msra.gmra.mrb[0].mxu0 %vm450_vm3, %v359_v15  ;;  %s660_s27 = sadd.s32 1, %s658_s26  ;;  %s659_s11 = sld [smem:[#allocation4 + %s658_s26]] }
  0x44   : > { %945 = vmatpush3.bf16.msra.mxu1 %v942_v11  ;;  %s661_s14 = sld [smem:[#allocation4 + %s660_s27]] }
  0x45   : > { %947 = vmatprep.subr.bf16.mxu1 %v946_v14 }
  0x48   : > { %949 = vmatpush3.bf16.msra.mxu1 %v946_v14 }
  0x49   : > { %951 = vmatprep.subr.bf16.mxu1 %v950_v18  ;;  %p685_p11 = scmp.lt.s32.totalorder %s659_s11, %s684_s28  ;;  %v662_v43 = vstv %s659_s11 }
  0x4a   : > { %p686_p12 = scmp.gt.s32.totalorder %s661_s14, %s1384_s17  ;;  %v665_v44 = vstv %s661_s14  ;;  %vm664_vm4 = vcmp.ge.s32.totalorder %v655_v42, %v662_v43  ;;  %vm663_vm6 = vcmp.ge.s32.totalorder %v654_v45, %v662_v43 }
  0x4b   : > { %vm667_vm5 = vcmp.lt.s32.totalorder %v655_v42, %v665_v44  ;;  %vm666_vm7 = vcmp.lt.s32.totalorder %v654_v45, %v665_v44 }
  0x4c   : > { %953 = vmatpush3.bf16.msra.mxu1 %v950_v18  ;;  %p687_p1 = pnand %p686_p12, %p685_p11  ;;  %vm669_vm8 = vmand %vm664_vm4, %vm667_vm5 }
  0x4d   : > { %955 = vmatprep.subr.bf16.mxu1 %v954_v21  ;;  %vm668_vm9 = vmand %vm663_vm6, %vm666_vm7 }
  0x4e   : > { %p688_p2 = pneg %p687_p1 }
  0x50   : > { %957 = vmatpush3.bf16.msra.mxu1 %v954_v21  ;;  %p1391_p3 = pnand %p688_p2, %p683_p0 }
  0x51   : > { %959 = vmatprep.subr.bf16.mxu1 %v958_v24  ;;  %s693_s20 = scalar_lea.vmem (!%p1391_p3), %s1313_s23, %s1379_s25 [#allocation5] }
  0x52   : > { %v694_v62 = vld [vmem:[%s693_s20] sm:$0x1] (!%p1391_p3) }
  0x54   : > { %961 = vmatpush3.bf16.msra.mxu1 %v958_v24 }
  0x55   : > { %963 = vmatprep.subr.bf16.mxu1 %v962_v27 }
  0x58   : > { %965 = vmatpush3.bf16.msra.mxu1 %v962_v27 }
  0x59   : > { %967 = vmatprep.subr.bf16.mxu1 %v966_v30 }
  0x5c   : > { %969 = vmatpush3.bf16.msra.mxu1 %v966_v30 }
 0x116   : > { %v902_v32 = vpop.f32.mrb[0].mxu0 }
 0x117   : > { %v544_v33 = vadd.f32 %v902_v32, %v859_v31  ;;  %v527_v34 = vpop.f32.mrb[1].mxu0 }
 0x118   : > { %v543_v35 = vadd.f32 %v859_v31, %v527_v34 }
 0x119   : > { %v546_v37 = vmax.f32 %v544_v33, 0.0 }
 0x11a   : > { %v545_v36 = vmax.f32 %v543_v35, 0.0 }
 0x11c   : > { %935 = vmatprep.mubr.f32.mxu1 %v545_v36 }
 0x11d   : > { %936 = vmatmul.mubr.f32.vlgmr.msra.gmra.mrb[0].mxu1 %v546_v37 }
 0x1f0   : > { %v937_v47 = vpop.f32.mrb[0].mxu1 }
 0x1f1   : > { %v642_v48 = vadd.f32 %v937_v47, %v860_v46  ;;  %v636_v49 = vpop.f32.mrb[1].mxu1 }
 0x1f2   : > { %v637_v50 = vadd.f32 %v860_v46, %v636_v49 }
 0x1f3   : > { %v646_v51 = vmax.f32 %v642_v48, 0.0 }
 0x1f4   : > { %v645_v52 = vmax.f32 %v637_v50, 0.0 }
 0x1f5   : > { %v675_v53 = vsel %vm669_vm8, %v646_v51, -3.4028235e+38 }
 0x1f6   : > { %v674_v54 = vsel %vm668_vm9, %v645_v52, -3.4028235e+38 }
 0x1f7   : > { %v676_v55 = vmax.f32 %v674_v54, %v675_v53 }
 0x1f9   : > { %v677_v56 = vrot.slane %v676_v55, 4 }
 0x1fb   : > { %v678_v57 = vmax.f32 %v676_v55, %v677_v56 }
 0x1fd   : > { %v679_v58 = vrot.slane %v678_v57, 2  ;;  %692 = sbr.rel (%p1391_p3) target bundleno = 520 (0x208), region = 56 }
 0x1ff   : > { %v680_v59 = vmax.f32 %v678_v57, %v679_v58 }
 0x201   : > { %v681_v60 = vrot.slane %v680_v59, 1 }
 0x203   : > { %v682_v61 = vmax.f32 %v680_v59, %v681_v60 }
 0x205   : > { %v695_v63 = vmax.f32 %v694_v62, %v682_v61 }
 0x207   : > { %696 = vst [vmem:[%s693_s20] sm:$0x1] %v695_v63 }
 0x208 PF: > { %s697_s0 = sadd.s32 1, %s1379_s25 }
 0x209   : > { %p698_p4 = scmp.lt.s32.totalorder %s697_s0, 2  ;;  %p724_p8 = scmp.lt.s32.totalorder %s697_s0, 3 }
 0x20b   : > { %s699_s26 = scalar_select %p698_p4, %s697_s0, 2 }
 0x20d   : > { %s700_s27 = sld [smem:[#allocation4 + %s699_s26]]  ;;  %s701_s11 = sadd.s32 1, %s699_s26 }
 0x20e   : > { %s702_s14 = sld [smem:[#allocation4 + %s701_s11]] }
 0x213   : > { %v703_v0 = vstv %s700_s27  ;;  %p725_p6 = scmp.lt.s32.totalorder %s700_s27, %s684_s28 }
 0x214   : > { %vm704_vm10 = vcmp.ge.s32.totalorder %v654_v45, %v703_v0  ;;  %vm705_vm11 = vcmp.ge.s32.totalorder %v655_v42, %v703_v0  ;;  %v706_v1 = vstv %s702_s14  ;;  %p726_p7 = scmp.gt.s32.totalorder %s702_s14, %s1384_s17 }
 0x215   : > { %vm707_vm12 = vcmp.lt.s32.totalorder %v654_v45, %v706_v1  ;;  %vm708_vm13 = vcmp.lt.s32.totalorder %v655_v42, %v706_v1 }
 0x216   : > { %vm709_vm14 = vmand %vm704_vm10, %vm707_vm12  ;;  %p727_p9 = pnand %p726_p7, %p725_p6 }
 0x217   : > { %vm710_vm15 = vmand %vm705_vm11, %vm708_vm13  ;;  %v715_v2 = vsel %vm709_vm14, %v645_v52, -3.4028235e+38 }
 0x218   : > { %v716_v3 = vsel %vm710_vm15, %v646_v51, -3.4028235e+38  ;;  %p728_p10 = pneg %p727_p9 }
 0x219   : > { %v717_v4 = vmax.f32 %v715_v2, %v716_v3 }
 0x21a   : > { %p729_p11 = pnand %p728_p10, %p724_p8 }
 0x21b   : > { %v718_v5 = vrot.slane %v717_v4, 4  ;;  %s788_s17 = scalar_lea.vmem (!%p729_p11), %s1313_s23, %s1379_s25 [#allocation5] }
 0x21c   : > { %v863_v11 = vld [vmem:[%s788_s17 + $0x1] sm:$0x1] (!%p729_p11) }
 0x21d   : > { %v719_v6 = vmax.f32 %v717_v4, %v718_v5 }
 0x21f   : > { %v720_v7 = vrot.slane %v719_v6, 2  ;;  %732 = sbr.rel (%p729_p11) target bundleno = 554 (0x22a), region = 60 }
 0x221   : > { %v721_v8 = vmax.f32 %v719_v6, %v720_v7 }
 0x223   : > { %v722_v9 = vrot.slane %v721_v8, 1 }
 0x225   : > { %v723_v10 = vmax.f32 %v721_v8, %v722_v9 }
 0x227   : > { %v735_v12 = vmax.f32 %v863_v11, %v723_v10 }
 0x229   : > { %864 = vst [vmem:[%s788_s17 + $0x1] sm:$0x1] %v735_v12 }
 0x22a PF: > { %s866_s28 = sshll.u32 %s1154_s21, 7  ;;  %s751_s20 = sshll.u32 %s1313_s23, 4  ;;  %s752_s20 = int_to_ptr.vmem [resolvable:$true] %s751_s20 }
 0x22b   : > { %s1413_s10 = scalar_lea.hbm %s1471_s9, %s866_s28  ;;  %s738_s0 = scalar_lea.sflag [#allocation6], %s330_s13 }
 0x22c   : > { %s1070_s26 = scalar_lea.vmem %s752_s20, 128  ;;  %s1171_s25 = smov [#allocation5]  }
 0x22d   : > { %p1071_p12 = scmp.ne.s32.totalorder %s752_s20, %s1070_s26  ;;  %s1074_s27 = sshll.u32 %s1171_s25, 4  ;;  %s1075_s27 = int_to_ptr.vmem [resolvable:$false] %s1074_s27 }
 0x22e   : > { %s1076_s11 = scalar_lea.vmem %s1075_s27, 256  ;;  %p1077_p2 = scmp.lt.s32.totalorder %s752_s20, %s1075_s27 }
 0x22f   : > { %p1072_p0 = pnand %p1071_p12, %p1277_p13  ;;  %p1078_p3 = scmp.lt.s32.totalorder %s1076_s11, %s1070_s26 }
 0x231   : > { %p1073_p1 = pneg %p1072_p0  ;;  %p1079_p4 = por %p1078_p3, %p1077_p2 }
 0x233   : > { %p1080_p6 = pnand %p1079_p4, %p1073_p1 }
 0x235   : > { %1083 = shalt.err (!%p1080_p6)
}
 0x236   : > { %s1084_s21 = scalar_lea.hbm %s1413_s10, 128  ;;  %s1088_s14 = scalar_lea.hbm %s1471_s9, 256 }
 0x237   : > { %p1085_p7 = scmp.ne.s32.totalorder %s1413_s10, %s1084_s21  ;;  %p1089_p10 = scmp.lt.u32.totalorder %s1413_s10, %s1471_s9 }
 0x238   : > { %p1090_p11 = scmp.lt.u32.totalorder %s1088_s14, %s1084_s21  ;;  %p1092_p0 = scmp.lt.u32.totalorder %s1084_s21, %s1413_s10 }
 0x239   : > { %p1086_p8 = pnand %p1085_p7, %p1277_p13 }
 0x23a   : > { %p1091_p12 = por %p1090_p11, %p1089_p10 }
 0x23b   : > { %p1087_p9 = pneg %p1086_p8 }
 0x23c   : > { %p1093_p1 = por %p1092_p0, %p1091_p12 }
 0x23e   : > { %p1094_p2 = pnand %p1093_p1, %p1087_p9 }
 0x240   : > { %1097 = shalt.err (!%p1094_p2)
}
 0x241   : > { %972 = dma.vmem_to_hbm [thread:$0]  (%p1277_p13), %s752_s20, 128, %s1413_s10, %s738_s0  }
 0x242 PF: > { %p978_p3 = scmp.ge.s32.totalorder %s1166_s24, 2  ;;  %s763_s15 = sand.u32 1, %s1138_s1  }
 0x243   : > { %s764_s16 = scalar_lea.sflag [#allocation6], %s763_s15 }
 0x244   : > { %p975_p4 = pnand %p978_p3, %p1287_p5 }
 0x246   : > { %1133 = dma.done.wait (!%p975_p4), %s764_s16, 128  }
 0x247   : > { %1135 = vsyncadd (!%p975_p4), %s764_s16, 4294967168  ;;  %s32_s24 = sadd.s32 1, %s1166_s24   ;;  %s1481_s21 = sld [smem:[#allocation9_spill]] }
 0x248   : > { %p29_p6 = scmp.ge.s32.totalorder %s32_s24, 6   ;;  %s1482_s29 = sld [smem:[#allocation10_spill]] }
 0x249   : > { %s1483_s23 = sld [smem:[#allocation11_spill]]  ;;  %s1484_s1 = smov %s1142_s18 }
 0x24a   : > { %s1485_s18 = smov %s1146_s19  ;;  %s1486_s19 = smov %s1295_s12 }
 0x24b   : > { %s1487_s20 = smov %s1158_s22  ;;  %31 = sbr.rel (!%p29_p6) target bundleno = 30 (0x1e), region = 100 }
 0x24e   : > { %s1488_s22 = smov %s1482_s29 }
 0x252   :  { %769 = vsyncpa [#allocation6], 1 }
 0x253   :  { %771 = vsyncpa [#allocation6 + $0x1], 1 }

</bundles_post_ra>
